<compile_context>
chip_gen: v5e
topology: v5e:2x2
jax: 0.10.0
libtpu: 0.0.40
codegen_flags: <defaults>
</compile_context>

<pallas_src>
import functools

import jax
import jax.numpy as jnp
from jax.experimental import pallas as pl
from jax.experimental.pallas import tpu as pltpu

_LANES = 128


def _dice_kernel(p_ref, t_ref, out_ref, num_acc, den_acc, *,
                 smooth, p_exp, rows_total, block_r):
    k = pl.program_id(1)

    @pl.when(k == 0)
    def _():
        num_acc[...] = jnp.zeros_like(num_acc)
        den_acc[...] = jnp.zeros_like(den_acc)

    pr = p_ref[...].astype(jnp.float32)   # (block_n, block_r, 128)
    tg = t_ref[...].astype(jnp.float32)

    # Mask out-of-range rows of the (possibly) ragged last row-block.  The
    # condition is static, so non-ragged configs pay nothing.  jnp.where (not
    # multiply) so that unspecified OOB bits (possibly NaN) are killed.
    if rows_total % block_r != 0:
        row_ids = (jax.lax.broadcasted_iota(jnp.int32, (block_r, _LANES), 0)
                   + k * block_r)
        valid = (row_ids < rows_total)[None, :, :]
        pr = jnp.where(valid, pr, 0.0)
        tg = jnp.where(valid, tg, 0.0)

    # Hot path: reduce the row (sublane) axis only; keep 128 lanes live in the
    # accumulators so the cross-lane reduce happens once, in finalize.
    num_acc[...] += jnp.sum(pr * tg, axis=1)
    if p_exp == 2:
        den_blk = pr * pr + tg * tg
    elif p_exp == 1:
        den_blk = pr + tg
    else:
        den_blk = jnp.power(pr, p_exp) + jnp.power(tg, p_exp)
    den_acc[...] += jnp.sum(den_blk, axis=1)

    @pl.when(k == pl.num_programs(1) - 1)
    def _():
        num = jnp.sum(num_acc[...], axis=1, keepdims=True) + jnp.float32(smooth)
        den = jnp.sum(den_acc[...], axis=1, keepdims=True) + jnp.float32(smooth)
        out_ref[...] = (1.0 - num / den).astype(out_ref.dtype)


def binary_dice_loss(predict, target, *, smooth=1.0, p=2, reduction="mean",
                     block_n=8, block_r=1024):
    assert predict.shape[0] == target.shape[0], \
        "predict & target batch size don't match"
    n = predict.shape[0]
    pr = predict.reshape(n, -1)   # row-major flatten == predict.view(N, -1)
    tg = target.reshape(n, -1)
    d = pr.shape[1]
    itemsize = jnp.dtype(pr.dtype).itemsize

    # Lane-align D. Only a <=127-element pad per sample, and only when needed.
    # TODO(synk): an in-kernel lane mask would avoid even this rare pad copy.
    if d % _LANES != 0:
        assert p > 0, "zero-padding the feature dim requires p > 0"
        pad = _LANES - d % _LANES
        pr = jnp.pad(pr, ((0, 0), (0, pad)))
        tg = jnp.pad(tg, ((0, 0), (0, pad)))
    rows = pr.shape[1] // _LANES
    pr = pr.reshape(n, rows, _LANES)   # contiguous -> free bitcast reshape
    tg = tg.reshape(n, rows, _LANES)

    # Clamp block sizes to legal, VMEM-friendly values.
    block_n = max(1, min(block_n, n))
    if block_n != n and block_n % 8 != 0:
        block_n = min(n, pl.cdiv(block_n, 8) * 8)
    if block_r >= rows:
        block_r = rows                      # full extent (always legal)
    else:
        block_r = max(8, (block_r // 8) * 8)  # sublane-aligned

    grid = (pl.cdiv(n, block_n), pl.cdiv(rows, block_r))

    # VMEM budget: 2 inputs x 2 pipeline buffers x block + accumulators.
    block_bytes = block_n * block_r * _LANES * itemsize
    vmem_need = 4 * block_bytes + 4 * block_n * _LANES * 4 + (1 << 20)
    vmem_limit = int(min(max(vmem_need, 32 * 1024 * 1024), 96 * 1024 * 1024))

    kernel = functools.partial(_dice_kernel, smooth=smooth, p_exp=p,
                               rows_total=rows, block_r=block_r)

    per_sample = pl.pallas_call(
        kernel,
        out_shape=jax.ShapeDtypeStruct((n, 1), jnp.float32),
        grid_spec=pltpu.PrefetchScalarGridSpec(
            num_scalar_prefetch=0,
            grid=grid,
            in_specs=[
                pl.BlockSpec((block_n, block_r, _LANES), lambda b, k: (b, k, 0)),
                pl.BlockSpec((block_n, block_r, _LANES), lambda b, k: (b, k, 0)),
            ],
            out_specs=pl.BlockSpec((block_n, 1), lambda b, k: (b, 0)),
            scratch_shapes=[
                pltpu.VMEM((block_n, _LANES), jnp.float32),  # num accumulator
                pltpu.VMEM((block_n, _LANES), jnp.float32),  # den accumulator
            ],
        ),
        compiler_params=pltpu.CompilerParams(
            dimension_semantics=("parallel", "arbitrary"),
            vmem_limit_bytes=vmem_limit),
        cost_estimate=pl.CostEstimate(
            flops=6 * n * d,
            transcendentals=0,
            bytes_accessed=2 * n * d * itemsize + n * 4),
    )(pr, tg)

    loss = per_sample[:, 0]
    if reduction == "mean":
        return jnp.mean(loss)
    elif reduction == "sum":
        return jnp.sum(loss)
    elif reduction == "none":
        return loss
    else:
        raise Exception("Unexpected reduction {}".format(reduction))


def _reference(predict, target, smooth=1.0, p=2, reduction="mean"):
    n = predict.shape[0]
    pr = predict.reshape(n, -1).astype(jnp.float32)
    tg = target.reshape(n, -1).astype(jnp.float32)
    num = jnp.sum(pr * tg, axis=1) + smooth
    den = jnp.sum(pr ** p + tg ** p, axis=1) + smooth
    loss = 1.0 - num / den
    if reduction == "mean":
        return jnp.mean(loss)
    elif reduction == "sum":
        return jnp.sum(loss)
    return loss


if __name__ == "__main__":
    key = jax.random.PRNGKey(0)
    k1, k2, k3, k4, k5, k6 = jax.random.split(key, 6)

    # Case 1: NCHW inputs, D divisible by 128, single block, 'mean'.
    predict = jax.nn.sigmoid(
        jax.random.normal(k1, (2, 4, 16, 16), dtype=jnp.float32))
    target = (jax.random.uniform(k2, (2, 4, 16, 16)) > 0.5).astype(jnp.float32)
    out = jax.block_until_ready(
        binary_dice_loss(predict, target, smooth=1.0, p=2, reduction="mean"))
    ref = _reference(predict, target, smooth=1.0, p=2, reduction="mean")
    assert jnp.allclose(out, ref, rtol=1e-5, atol=1e-5), (out, ref)

    # Case 2: multiple row blocks with a ragged tail (in-kernel mask), 'none'.
    p2 = jax.nn.sigmoid(jax.random.normal(k3, (3, 1, 16, 96), dtype=jnp.float32))
    t2 = (jax.random.uniform(k4, (3, 1, 16, 96)) > 0.5).astype(jnp.float32)
    out2 = jax.block_until_ready(
        binary_dice_loss(p2, t2, smooth=1.0, p=2, reduction="none", block_r=8))
    ref2 = _reference(p2, t2, smooth=1.0, p=2, reduction="none")
    assert jnp.allclose(out2, ref2, rtol=1e-5, atol=1e-5), (out2, ref2)

    # Case 3: D not a multiple of 128 (lane pad path), 'sum'.
    p3 = jax.nn.sigmoid(jax.random.normal(k5, (2, 3, 10, 10), dtype=jnp.float32))
    t3 = (jax.random.uniform(k6, (2, 3, 10, 10)) > 0.5).astype(jnp.float32)
    out3 = jax.block_until_ready(
        binary_dice_loss(p3, t3, smooth=1.0, p=2, reduction="sum"))
    ref3 = _reference(p3, t3, smooth=1.0, p=2, reduction="sum")
    assert jnp.allclose(out3, ref3, rtol=1e-5, atol=1e-5), (out3, ref3)

    print("KERNEL_OK")
</pallas_src>

<mosaic_0001>
module attributes {stable_mosaic.version = 11 : i64} {
  func.func @_dice_kernel(%arg0: i32, %arg1: i32, %arg2: memref<2x8x128xf32, #tpu.memory_space<vmem>>, %arg3: memref<2x8x128xf32, #tpu.memory_space<vmem>>, %arg4: memref<2x1xf32, #tpu.memory_space<vmem>>, %arg5: memref<2x128xf32, #tpu.memory_space<vmem>>, %arg6: memref<2x128xf32, #tpu.memory_space<vmem>>) attributes {dimension_semantics = [#tpu.dimension_semantics<parallel>, #tpu.dimension_semantics<arbitrary>], iteration_bounds = array<i64: 1, 1>, scalar_prefetch = 0 : i64, scratch_operands = 2 : i64, tpu.core_type = #tpu.core_type<tc>, window_params = [{transform_indices = @transform_0, window_bounds = array<i64: 2, 8, 128>}, {transform_indices = @transform_1, window_bounds = array<i64: 2, 8, 128>}, {transform_indices = @transform_2, window_bounds = array<i64: 2, 1>}]} {
    %c0_i32 = arith.constant 0 : i32
    %0 = arith.cmpi eq, %arg1, %c0_i32 : i32
    %1 = arith.extui %0 : i1 to i32
    %c0_i32_0 = arith.constant 0 : i32
    %2 = arith.cmpi ne, %1, %c0_i32_0 : i32
    scf.if %2 {
      %cst_17 = arith.constant 0.000000e+00 : f32
      %20 = vector.broadcast %cst_17 : f32 to vector<2x128xf32>
      %c0_18 = arith.constant 0 : index
      %c0_19 = arith.constant 0 : index
      %21 = vector.load %arg5[%c0_18, %c0_19] : memref<2x128xf32, #tpu.memory_space<vmem>>, vector<2x128xf32>
      tpu.vector_store %arg5[%c0_18, %c0_19], %20 {strides = array<i32>} : memref<2x128xf32, #tpu.memory_space<vmem>>, vector<2x128xf32>,
      %cst_20 = arith.constant 0.000000e+00 : f32
      %22 = vector.broadcast %cst_20 : f32 to vector<2x128xf32>
      %c0_21 = arith.constant 0 : index
      %c0_22 = arith.constant 0 : index
      %23 = vector.load %arg6[%c0_21, %c0_22] : memref<2x128xf32, #tpu.memory_space<vmem>>, vector<2x128xf32>
      tpu.vector_store %arg6[%c0_21, %c0_22], %22 {strides = array<i32>} : memref<2x128xf32, #tpu.memory_space<vmem>>, vector<2x128xf32>,
    } else {
    }
    %c0 = arith.constant 0 : index
    %c0_1 = arith.constant 0 : index
    %c0_2 = arith.constant 0 : index
    %3 = vector.load %arg2[%c0, %c0_1, %c0_2] : memref<2x8x128xf32, #tpu.memory_space<vmem>>, vector<2x8x128xf32>
    %c0_3 = arith.constant 0 : index
    %c0_4 = arith.constant 0 : index
    %c0_5 = arith.constant 0 : index
    %4 = vector.load %arg3[%c0_3, %c0_4, %c0_5] : memref<2x8x128xf32, #tpu.memory_space<vmem>>, vector<2x8x128xf32>
    %c0_6 = arith.constant 0 : index
    %c0_7 = arith.constant 0 : index
    %5 = vector.load %arg5[%c0_6, %c0_7] : memref<2x128xf32, #tpu.memory_space<vmem>>, vector<2x128xf32>
    %6 = arith.mulf %3, %4 : vector<2x8x128xf32>
    %cst = arith.constant dense<0.000000e+00> : vector<2x128xf32>
    %7 = vector.multi_reduction <add>, %6, %cst [1] : vector<2x8x128xf32> to vector<2x128xf32>
    %8 = arith.addf %5, %7 : vector<2x128xf32>
    %c0_8 = arith.constant 0 : index
    %c0_9 = arith.constant 0 : index
    %9 = vector.load %arg5[%c0_8, %c0_9] : memref<2x128xf32, #tpu.memory_space<vmem>>, vector<2x128xf32>
    tpu.vector_store %arg5[%c0_8, %c0_9], %8 {strides = array<i32>} : memref<2x128xf32, #tpu.memory_space<vmem>>, vector<2x128xf32>,
    %10 = arith.mulf %3, %3 : vector<2x8x128xf32>
    %11 = arith.mulf %4, %4 : vector<2x8x128xf32>
    %12 = arith.addf %10, %11 : vector<2x8x128xf32>
    %c0_10 = arith.constant 0 : index
    %c0_11 = arith.constant 0 : index
    %13 = vector.load %arg6[%c0_10, %c0_11] : memref<2x128xf32, #tpu.memory_space<vmem>>, vector<2x128xf32>
    %cst_12 = arith.constant dense<0.000000e+00> : vector<2x128xf32>
    %14 = vector.multi_reduction <add>, %12, %cst_12 [1] : vector<2x8x128xf32> to vector<2x128xf32>
    %15 = arith.addf %13, %14 : vector<2x128xf32>
    %c0_13 = arith.constant 0 : index
    %c0_14 = arith.constant 0 : index
    %16 = vector.load %arg6[%c0_13, %c0_14] : memref<2x128xf32, #tpu.memory_space<vmem>>, vector<2x128xf32>
    tpu.vector_store %arg6[%c0_13, %c0_14], %15 {strides = array<i32>} : memref<2x128xf32, #tpu.memory_space<vmem>>, vector<2x128xf32>,
    %c0_i32_15 = arith.constant 0 : i32
    %17 = arith.cmpi eq, %arg1, %c0_i32_15 : i32
    %18 = arith.extui %17 : i1 to i32
    %c0_i32_16 = arith.constant 0 : i32
    %19 = arith.cmpi ne, %18, %c0_i32_16 : i32
    scf.if %19 {
      %c0_17 = arith.constant 0 : index
      %c0_18 = arith.constant 0 : index
      %20 = vector.load %arg5[%c0_17, %c0_18] : memref<2x128xf32, #tpu.memory_space<vmem>>, vector<2x128xf32>
      %cst_19 = arith.constant dense<0.000000e+00> : vector<2xf32>
      %21 = vector.multi_reduction <add>, %20, %cst_19 [1] : vector<2x128xf32> to vector<2xf32>
      %22 = vector.shape_cast %21 : vector<2xf32> to vector<2x1xf32>
      %cst_20 = arith.constant 1.000000e+00 : f32
      %23 = vector.broadcast %cst_20 : f32 to vector<2x1xf32>
      %24 = arith.addf %22, %23 : vector<2x1xf32>
      %c0_21 = arith.constant 0 : index
      %c0_22 = arith.constant 0 : index
      %25 = vector.load %arg6[%c0_21, %c0_22] : memref<2x128xf32, #tpu.memory_space<vmem>>, vector<2x128xf32>
      %cst_23 = arith.constant dense<0.000000e+00> : vector<2xf32>
      %26 = vector.multi_reduction <add>, %25, %cst_23 [1] : vector<2x128xf32> to vector<2xf32>
      %27 = vector.shape_cast %26 : vector<2xf32> to vector<2x1xf32>
      %cst_24 = arith.constant 1.000000e+00 : f32
      %28 = vector.broadcast %cst_24 : f32 to vector<2x1xf32>
      %29 = arith.addf %27, %28 : vector<2x1xf32>
      %30 = arith.divf %24, %29 : vector<2x1xf32>
      %cst_25 = arith.constant 1.000000e+00 : f32
      %31 = vector.broadcast %cst_25 : f32 to vector<2x1xf32>
      %32 = arith.subf %31, %30 : vector<2x1xf32>
      %c0_26 = arith.constant 0 : index
      %c0_27 = arith.constant 0 : index
      %33 = vector.load %arg4[%c0_26, %c0_27] : memref<2x1xf32, #tpu.memory_space<vmem>>, vector<2x1xf32>
      tpu.vector_store %arg4[%c0_26, %c0_27], %32 {strides = array<i32>} : memref<2x1xf32, #tpu.memory_space<vmem>>, vector<2x1xf32>,
    } else {
    }
    return
  }
  func.func @transform_0(%arg0: i32, %arg1: i32) -> (i32, i32, i32) {
    %c0_i32 = arith.constant 0 : i32
    %c0_i32_0 = arith.constant 0 : i32
    return %arg0, %arg1, %c0_i32 : i32, i32, i32
  }
  func.func @transform_1(%arg0: i32, %arg1: i32) -> (i32, i32, i32) {
    %c0_i32 = arith.constant 0 : i32
    %c0_i32_0 = arith.constant 0 : i32
    return %arg0, %arg1, %c0_i32 : i32, i32, i32
  }
  func.func @transform_2(%arg0: i32, %arg1: i32) -> (i32, i32) {
    %c0_i32 = arith.constant 0 : i32
    %c0_i32_0 = arith.constant 0 : i32
    return %arg0, %c0_i32 : i32, i32
  }
}

</mosaic_0001>

<bundles_post_ra>
// kernel: tpu_custom_call.1
= control target key start
LH: loop header
LB: loop body
LE: loop exit
PB: predicated region body
PF: predicated region fallthrough
CT: control target
= control target key end

     0   :  { %7 = vsyncpa [#allocation5], 0  ;;  %s226_s0 = inlined_call_operand.hbm [shape: f32[2,8,128], index: 0, kind: input, shape index: {}]   ;;  %s227_s1 = inlined_call_operand.hbm [shape: f32[2,8,128], index: 1, kind: input, shape index: {}]   ;;  %s228_s2 = inlined_call_operand.vmem [shape: f32[2,1], index: 2, kind: output, shape index: {}]  }
   0x1   :  { %s13_s11 = sshll.u32 %s226_s0, 4  ;;  %s14_s11 = int_to_ptr.hbm [resolvable:$true] %s13_s11 }
   0x2   :  { %8 = vsyncpa [#allocation7], 0  ;;  %s197_s12 = smov [#allocation4]   ;;  %s26_s16 = sshll.u32 %s227_s1, 4  ;;  %s27_s16 = int_to_ptr.hbm [resolvable:$true] %s26_s16 }
   0x3   :  { %s15_s13 = sshll.u32 %s197_s12, 4  ;;  %s198_s17 = smov 128   ;;  %s16_s13 = int_to_ptr.vmem [resolvable:$true] %s15_s13 }
   0x4   :  { %s199_s18 = smov 8   ;;  %s200_s19 = smov [#allocation6]  }
   0x5   :  { %21 = dma.hbm_to_vmem [thread:$0]  %s14_s11, 256, %s16_s13, [#allocation5], %s198_s17, %s198_s17, %s199_s18  }
   0x6   :  { %s28_s20 = sshll.u32 %s200_s19, 4  ;;  %s29_s20 = int_to_ptr.vmem [resolvable:$true] %s28_s20 }
   0x7   :  { %34 = dma.hbm_to_vmem [thread:$0]  %s27_s16, 256, %s29_s20, [#allocation7], %s198_s17, %s198_s17, %s199_s18  }
   0x8   :  { %193 = dma.done.wait [#allocation5], 256  }
   0x9   :  { %194 = vsyncadd [#allocation5], 4294967040 }
   0xa   :  { %195 = dma.done.wait [#allocation7], 256  }
   0xb   :  { %196 = vsyncadd [#allocation7], 4294967040  ;;  %v201_v0 = vmov 0.0   ;;  %v49_v1 = vld [vmem:[#allocation4] sm:$0xff]  ;;  %v50_v2 = vld [vmem:[#allocation4 + $0x8] sm:$0xff]  ;;  %vm70_vm0 = vcmask 1041409  }
   0xc   :  { %48 = vst [vmem:[#allocation3] sm:$0x3] %v201_v0  ;;  %v51_v3 = vld [vmem:[#allocation6] sm:$0xff]  ;;  %v52_v4 = vld [vmem:[#allocation6 + $0x8] sm:$0xff]  ;;  %v75_v5 = vmul.f32 %v49_v1, %v49_v1  ;;  %v76_v6 = vmul.f32 %v50_v2, %v50_v2  ;;  %vm104_vm1 = vcmask 1041408   ;;  %vm130_vm6 = vcmask 1024  }
   0xd   :  { %47 = vst [vmem:[#allocation2] sm:$0x3] %v201_v0  ;;  %v77_v7 = vmul.f32 %v51_v3, %v51_v3  ;;  %v54_v8 = vmul.f32 %v51_v3, %v49_v1  ;;  %v78_v9 = vmul.f32 %v52_v4, %v52_v4  ;;  %v55_v10 = vmul.f32 %v52_v4, %v50_v2 }
   0xf   :  { %v79_v11 = vadd.f32 %v77_v7, %v75_v5  ;;  %v56_v12 = vrot.slane %v54_v8, 4  ;;  %v80_v13 = vadd.f32 %v78_v9, %v76_v6  ;;  %v62_v14 = vrot.slane %v55_v10, 4 }
  0x11   :  { %v82_v15 = vrot.slane %v79_v11, 4  ;;  %v57_v16 = vadd.f32 %v56_v12, %v54_v8  ;;  %v88_v17 = vrot.slane %v80_v13, 4  ;;  %v63_v18 = vadd.f32 %v62_v14, %v55_v10 }
  0x13   :  { %v83_v19 = vadd.f32 %v82_v15, %v79_v11  ;;  %v58_v20 = vrot.slane %v57_v16, 2  ;;  %v89_v21 = vadd.f32 %v88_v17, %v80_v13  ;;  %v64_v22 = vrot.slane %v63_v18, 2  ;;  %v81_v37 = vld [vmem:[#allocation3] sm:$0x3] }
  0x14   :  { %v53_v34 = vld [vmem:[#allocation2] sm:$0x3] }
  0x15   :  { %v84_v23 = vrot.slane %v83_v19, 2  ;;  %v59_v24 = vadd.f32 %v58_v20, %v57_v16  ;;  %v90_v25 = vrot.slane %v89_v21, 2  ;;  %v65_v26 = vadd.f32 %v64_v22, %v63_v18 }
  0x17   :  { %v85_v27 = vadd.f32 %v84_v23, %v83_v19  ;;  %v60_v28 = vrot.slane %v59_v24, 1  ;;  %v91_v29 = vadd.f32 %v90_v25, %v89_v21  ;;  %v66_v30 = vrot.slane %v65_v26, 1 }
  0x19   :  { %v86_v31 = vrot.slane %v85_v27, 1  ;;  %v61_v32 = vadd.f32 %v60_v28, %v59_v24  ;;  %v92_v33 = vrot.slane %v91_v29, 1  ;;  %v67_v35 = vadd.f32 %v66_v30, %v65_v26 }
  0x1b   :  { %v87_v36 = vadd.f32 %v86_v31, %v85_v27  ;;  %v93_v38 = vadd.f32 %v92_v33, %v91_v29  ;;  %v71_v39 = vsel %vm70_vm0, %v67_v35, %v61_v32 }
  0x1c   :  { %v73_v40 = vadd.f32 %v71_v39, %v53_v34 }
  0x1d   :  { %v96_v41 = vsel %vm70_vm0, %v93_v38, %v87_v36 }
  0x1e   :  { %v98_v42 = vadd.f32 %v96_v41, %v81_v37  ;;  %74 = vst [vmem:[#allocation2] sm:$0x3] %v73_v40 }
  0x20   :  { %99 = vst [vmem:[#allocation3] sm:$0x3] %v98_v42 }
  0x25   :  { %v103_v45 = vld [vmem:[#allocation2] sm:$0x3] }
  0x26   :  { %v105_v46 = vsel %vm104_vm1, %v103_v45, 0.0 }
  0x27   :  { %v109_v43 = vld [vmem:[#allocation3] sm:$0x3] }
  0x28   :  { %v110_v44 = vsel %vm104_vm1, %v109_v43, 0.0 }
  0x29   :  { %111 = vadd.xlane.f32.xlu0 %v110_v44 }
  0x31   :  { %106 = vadd.xlane.f32.xlu0 %v105_v46 }
  0x9c   :  { %v112_v47 = vpop.xlane.xlu0 %111 }
  0x9d   :  { %v113_v48 = vadd.f32 1.0, %v112_v47 }
  0x9f   :  { %143 = vrcp.f32 %v113_v48  ;;  %v125_v52 = vand.u32 2147483648, %v113_v48  ;;  %v123_v55 = vand.u32 2147483647, %v113_v48  ;;  %vm119_vm3 = vweird.f32 %v113_v48 }
  0xa1   :  { %v126_v58 = vor.u32 1.1754944e-38, %v125_v52  ;;  %vm124_vm5 = vcmp.eq.f32.partialorder %v123_v55, 8.507059e+37 }
  0xa4   :  { %v107_v53 = vpop.xlane.xlu0 %106 }
  0xa5   :  { %v144_v49 = vpop.eup %143  ;;  %v108_v57 = vadd.f32 1.0, %v107_v53 }
  0xa6   :  { %v115_v50 = vmul.f32 %v144_v49, %v113_v48  ;;  %vm120_vm2 = vweird.f32 %v144_v49 }
  0xa7   :  { %vm121_vm4 = vmor %vm119_vm3, %vm120_vm2 }
  0xa8   :  { %v116_v51 = vsub.f32 1.0, %v115_v50 }
  0xaa   :  { %v117_v54 = vmul.f32 %v144_v49, %v116_v51 }
  0xac   :  { %v118_v56 = vadd.f32 %v144_v49, %v117_v54 }
  0xae   :  { %v122_v59 = vsel %vm121_vm4, %v144_v49, %v118_v56 }
  0xaf   :  { %v127_v60 = vsel %vm124_vm5, %v126_v58, %v122_v59 }
  0xb0   :  { %v128_v61 = vmul.f32 %v127_v60, %v108_v57 }
  0xb2   :  { %v129_v62 = vsub.f32 1.0, %v128_v61 }
  0xb4   :  { %131 = vst.msk [vmem:[%s228_s2] sm:$0x3] %vm130_vm6, %v129_v62 }
  0xb5   :  { %136 = vsyncpa [#allocation5], 1 }
  0xb6   :  { %137 = vsyncpa [#allocation7], 1 }

</bundles_post_ra>
